<compile_context>
chip_gen: v5e
topology: v5e:2x2
jax: 0.10.0
libtpu: 0.0.40
codegen_flags: <defaults>
</compile_context>

<pallas_src>
import jax
import jax.numpy as jnp
from jax.experimental import pallas as pl
from jax.experimental.pallas import tpu as pltpu


def _policy_kernel(state_ref, wpack_ref, bpack_ref, out_ref):
    """feature(Linear+ReLU x2) -> fused head (mod logits | sigmoid power) as (TB, 4)."""
    sd = state_ref.shape[1]       # state_dim
    hd = wpack_ref.shape[1]       # hidden_dim

    # Static ref slices into the packed weight / bias buffers (no extra DMA).
    w1 = wpack_ref[0:sd, :]                     # (sd, hd)  bf16
    w2 = wpack_ref[sd:sd + hd, :]               # (hd, hd)  bf16
    wh = wpack_ref[sd + hd:sd + 2 * hd, :]      # (hd, hd)  bf16, cols >= 4 are zero
    b1 = bpack_ref[0:1, :]                      # (1, hd)   f32
    b2 = bpack_ref[1:2, :]                      # (1, hd)   f32
    bh = bpack_ref[2:3, :]                      # (1, hd)   f32, cols >= 4 are zero

    x = state_ref[...].astype(jnp.bfloat16)     # no-op if state is already bf16

    h1 = jnp.dot(x, w1, preferred_element_type=jnp.float32) + b1
    h1 = jnp.maximum(h1, 0.0).astype(jnp.bfloat16)

    h2 = jnp.dot(h1, w2, preferred_element_type=jnp.float32) + b2
    h2 = jnp.maximum(h2, 0.0).astype(jnp.bfloat16)

    # Fused head matmul (padded to full hidden width -> same single MXU pass).
    head = jnp.dot(h2, wh, preferred_element_type=jnp.float32) + bh   # (TB, hd)

    # Epilogue: two static ref stores; sigmoid only on the power column.
    # (No iota vreg, no VPU select, no exp on the 3 logit columns.)
    # Padded rows of a partial last block flow through the math harmlessly;
    # Pallas masks out-of-bounds rows on writeback.
    out_ref[:, 0:3] = head[:, 0:3]                       # mod logits
    out_ref[:, 3:4] = jax.nn.sigmoid(head[:, 3:4])       # sigmoid(power_mean)


def _choose_batch_tile(batch):
    """Batch tile size.

    * B <= 256: single block (call is launch/DMA-bound; tiling only adds steps).
    * B  > 256: split into >= 2 blocks so the "parallel" grid axis shards
      across v7x's two TensorCores, with the tile capped at 1024 rows.
    """
    if batch <= 256:
        return batch
    half = -(-batch // 2)             # cdiv(batch, 2)
    half = ((half + 7) // 8) * 8      # sublane-align
    return min(half, 1024)


def link_adaptation_policy_forward(state, params):
    """Runs the LinkAdaptationPolicy forward pass.

    Args:
      state:  (B, state_dim) float32 or bfloat16
      params: dict with packed weights (see init_params)

    Returns:
      (mod_logits (B, 3), power_mean (B, 1), power_std (1,))
    """
    B, state_dim = state.shape
    w_pack = params["w_pack"]
    b_pack = params["b_pack"]
    hidden = w_pack.shape[1]
    rows = w_pack.shape[0]

    TB = _choose_batch_tile(B)
    grid = (pl.cdiv(B, TB),)

    flops = 2 * B * (state_dim * hidden + 2 * hidden * hidden)
    bytes_accessed = (state.size * state.dtype.itemsize + w_pack.size * 2
                      + b_pack.size * 4 + B * 4 * 4)

    out4 = pl.pallas_call(
        _policy_kernel,
        out_shape=jax.ShapeDtypeStruct((B, 4), jnp.float32),
        grid_spec=pltpu.PrefetchScalarGridSpec(
            num_scalar_prefetch=0,
            grid=grid,
            in_specs=[
                pl.BlockSpec((TB, state_dim), lambda i: (i, 0)),   # streamed batch tile
                pl.BlockSpec((rows, hidden), lambda i: (0, 0)),    # weights stay resident
                pl.BlockSpec((3, hidden), lambda i: (0, 0)),       # biases stay resident
            ],
            out_specs=pl.BlockSpec((TB, 4), lambda i: (i, 0)),
        ),
        compiler_params=pltpu.CompilerParams(
            dimension_semantics=("parallel",)),
        cost_estimate=pl.CostEstimate(
            flops=flops, transcendentals=B, bytes_accessed=bytes_accessed),
    )(state, w_pack, b_pack)

    mod_logits = out4[:, :3]
    power_mean = out4[:, 3:4]
    # power_std = exp(power_log_std).clamp(0.05, 0.5) -- scalar param, plain JAX glue
    power_std = jnp.clip(jnp.exp(params["power_log_std"]), 0.05, 0.5)
    return mod_logits, power_mean, power_std


def init_params(key, state_dim, hidden_dim=64):
    """PyTorch-Linear-style uniform init, packed into fused kernel buffers."""
    assert hidden_dim >= 4
    ks = jax.random.split(key, 8)

    def lin(kw, kb, fan_in, fan_out):
        bound = 1.0 / jnp.sqrt(jnp.float32(fan_in))
        w = jax.random.uniform(kw, (fan_in, fan_out), jnp.float32, -bound, bound)
        b = jax.random.uniform(kb, (fan_out,), jnp.float32, -bound, bound)
        return w, b

    w1, b1 = lin(ks[0], ks[1], state_dim, hidden_dim)
    w2, b2 = lin(ks[2], ks[3], hidden_dim, hidden_dim)
    wm, bm = lin(ks[4], ks[5], hidden_dim, 3)
    wp, bp = lin(ks[6], ks[7], hidden_dim, 1)

    # Fused head: cols 0..2 = mod_head, col 3 = power_mean, rest zero-padded.
    w_head = jnp.zeros((hidden_dim, hidden_dim), jnp.float32)
    w_head = w_head.at[:, 0:3].set(wm).at[:, 3:4].set(wp)
    b_head = jnp.zeros((hidden_dim,), jnp.float32)
    b_head = b_head.at[0:3].set(bm).at[3].set(bp[0])

    # One weight buffer (bf16, native MXU path) + one bias buffer (f32).
    w_pack = jnp.concatenate([w1, w2, w_head], axis=0).astype(jnp.bfloat16)
    b_pack = jnp.stack([b1, b2, b_head], axis=0).astype(jnp.float32)  # (3, hidden)

    return {
        "w_pack": w_pack,
        "b_pack": b_pack,
        "power_log_std": jnp.array([-0.5], dtype=jnp.float32),
    }


def _reference_forward(state, params):
    """Pure-JAX f32 reference using the same (bf16-quantized) weights."""
    w_pack = params["w_pack"].astype(jnp.float32)
    b_pack = params["b_pack"]
    sd = state.shape[1]
    hd = w_pack.shape[1]
    w1, w2, wh = w_pack[:sd], w_pack[sd:sd + hd], w_pack[sd + hd:sd + 2 * hd]
    b1, b2, bh = b_pack[0], b_pack[1], b_pack[2]
    h1 = jnp.maximum(state.astype(jnp.float32) @ w1 + b1, 0.0)
    h2 = jnp.maximum(h1 @ w2 + b2, 0.0)
    head = h2 @ wh + bh
    return head[:, :3], jax.nn.sigmoid(head[:, 3:4])


if __name__ == "__main__":
    key = jax.random.PRNGKey(0)
    k_state, k_params = jax.random.split(key)

    state_dim = 16
    hidden_dim = 64
    batch = 8

    params = init_params(k_params, state_dim, hidden_dim)
    state = jax.random.normal(k_state, (batch, state_dim), dtype=jnp.float32)

    mod_logits, power_mean, power_std = link_adaptation_policy_forward(state, params)
    jax.block_until_ready((mod_logits, power_mean, power_std))

    assert mod_logits.shape == (batch, 3)
    assert power_mean.shape == (batch, 1)
    assert power_std.shape == (1,)
    assert bool(jnp.all((power_mean >= 0.0) & (power_mean <= 1.0)))
    assert bool(jnp.all((power_std >= 0.05) & (power_std <= 0.5)))
    assert bool(jnp.all(jnp.isfinite(mod_logits)))

    # Correctness vs pure-JAX reference (bf16 activation path => loose tolerance).
    ref_logits, ref_power = _reference_forward(state, params)
    assert bool(jnp.all(jnp.abs(mod_logits - ref_logits) < 5e-2))
    assert bool(jnp.all(jnp.abs(power_mean - ref_power) < 5e-2))

    print("KERNEL_OK")
</pallas_src>

<mosaic_0001>
module attributes {stable_mosaic.version = 11 : i64} {
  func.func @_policy_kernel(%arg0: i32, %arg1: memref<8x16xf32, #tpu.memory_space<vmem>>, %arg2: memref<144x64xbf16, #tpu.memory_space<vmem>>, %arg3: memref<3x64xf32, #tpu.memory_space<vmem>>, %arg4: memref<8x4xf32, #tpu.memory_space<vmem>>) attributes {dimension_semantics = [#tpu.dimension_semantics<parallel>], iteration_bounds = array<i64: 1>, scalar_prefetch = 0 : i64, scratch_operands = 0 : i64, tpu.core_type = #tpu.core_type<tc>, window_params = [{transform_indices = @transform_0, window_bounds = array<i64: 8, 16>}, {pipeline_mode = #tpu.pipeline_mode<synchronous>, transform_indices = @transform_1, window_bounds = array<i64: 144, 64>}, {pipeline_mode = #tpu.pipeline_mode<synchronous>, transform_indices = @transform_2, window_bounds = array<i64: 3, 64>}, {transform_indices = @transform_3, window_bounds = array<i64: 8, 4>}]} {
    %c0 = arith.constant 0 : index
    %c0_0 = arith.constant 0 : index
    %0 = vector.load %arg2[%c0, %c0_0] : memref<144x64xbf16, #tpu.memory_space<vmem>>, vector<16x64xbf16>
    %c16 = arith.constant 16 : index
    %c0_1 = arith.constant 0 : index
    %1 = vector.load %arg2[%c16, %c0_1] : memref<144x64xbf16, #tpu.memory_space<vmem>>, vector<64x64xbf16>
    %c80 = arith.constant 80 : index
    %c0_2 = arith.constant 0 : index
    %2 = vector.load %arg2[%c80, %c0_2] : memref<144x64xbf16, #tpu.memory_space<vmem>>, vector<64x64xbf16>
    %c0_3 = arith.constant 0 : index
    %c0_4 = arith.constant 0 : index
    %3 = vector.load %arg3[%c0_3, %c0_4] : memref<3x64xf32, #tpu.memory_space<vmem>>, vector<1x64xf32>
    %c1 = arith.constant 1 : index
    %c0_5 = arith.constant 0 : index
    %4 = vector.load %arg3[%c1, %c0_5] : memref<3x64xf32, #tpu.memory_space<vmem>>, vector<1x64xf32>
    %c2 = arith.constant 2 : index
    %c0_6 = arith.constant 0 : index
    %5 = vector.load %arg3[%c2, %c0_6] : memref<3x64xf32, #tpu.memory_space<vmem>>, vector<1x64xf32>
    %c0_7 = arith.constant 0 : index
    %c0_8 = arith.constant 0 : index
    %6 = vector.load %arg1[%c0_7, %c0_8] : memref<8x16xf32, #tpu.memory_space<vmem>>, vector<8x16xf32>
    %7 = arith.truncf %6 : vector<8x16xf32> to vector<8x16xbf16>
    %cst = arith.constant dense<0.000000e+00> : vector<8x64xf32>
    %8 = tpu.matmul %7, %0, %cst {dimension_numbers = #tpu.dot_dimension_numbers<[1], [0], [0], [1], [0, 0, 1, 1], [], []>} : vector<8x16xbf16>, vector<16x64xbf16>, vector<8x64xf32> -> vector<8x64xf32>
    %9 = vector.broadcast %3 : vector<1x64xf32> to vector<8x64xf32>
    %10 = arith.addf %8, %9 : vector<8x64xf32>
    %cst_9 = arith.constant 0.000000e+00 : f32
    %11 = vector.broadcast %cst_9 : f32 to vector<8x64xf32>
    %12 = arith.maximumf %10, %11 : vector<8x64xf32>
    %13 = arith.truncf %12 : vector<8x64xf32> to vector<8x64xbf16>
    %cst_10 = arith.constant dense<0.000000e+00> : vector<8x64xf32>
    %14 = tpu.matmul %13, %1, %cst_10 {dimension_numbers = #tpu.dot_dimension_numbers<[1], [0], [0], [1], [0, 0, 1, 1], [], []>} : vector<8x64xbf16>, vector<64x64xbf16>, vector<8x64xf32> -> vector<8x64xf32>
    %15 = vector.broadcast %4 : vector<1x64xf32> to vector<8x64xf32>
    %16 = arith.addf %14, %15 : vector<8x64xf32>
    %cst_11 = arith.constant 0.000000e+00 : f32
    %17 = vector.broadcast %cst_11 : f32 to vector<8x64xf32>
    %18 = arith.maximumf %16, %17 : vector<8x64xf32>
    %19 = arith.truncf %18 : vector<8x64xf32> to vector<8x64xbf16>
    %cst_12 = arith.constant dense<0.000000e+00> : vector<8x64xf32>
    %20 = tpu.matmul %19, %2, %cst_12 {dimension_numbers = #tpu.dot_dimension_numbers<[1], [0], [0], [1], [0, 0, 1, 1], [], []>} : vector<8x64xbf16>, vector<64x64xbf16>, vector<8x64xf32> -> vector<8x64xf32>
    %21 = vector.broadcast %5 : vector<1x64xf32> to vector<8x64xf32>
    %22 = arith.addf %20, %21 : vector<8x64xf32>
    %23 = vector.extract_strided_slice %22 {offsets = [0, 0], sizes = [8, 3], strides = [1, 1]} : vector<8x64xf32> to vector<8x3xf32>
    %c0_13 = arith.constant 0 : index
    %c0_14 = arith.constant 0 : index
    %24 = vector.load %arg4[%c0_13, %c0_14] : memref<8x4xf32, #tpu.memory_space<vmem>>, vector<8x3xf32>
    tpu.vector_store %arg4[%c0_13, %c0_14], %23 {strides = array<i32>} : memref<8x4xf32, #tpu.memory_space<vmem>>, vector<8x3xf32>,
    %25 = vector.extract_strided_slice %22 {offsets = [0, 3], sizes = [8, 1], strides = [1, 1]} : vector<8x64xf32> to vector<8x1xf32>
    %26 = arith.negf %25 : vector<8x1xf32>
    %27 = math.exp %26 : vector<8x1xf32>
    %cst_15 = arith.constant 1.000000e+00 : f32
    %28 = vector.broadcast %cst_15 : f32 to vector<8x1xf32>
    %29 = arith.addf %28, %27 : vector<8x1xf32>
    %30 = arith.divf %28, %29 : vector<8x1xf32>
    %c0_16 = arith.constant 0 : index
    %c3 = arith.constant 3 : index
    %31 = vector.load %arg4[%c0_16, %c3] : memref<8x4xf32, #tpu.memory_space<vmem>>, vector<8x1xf32>
    tpu.vector_store %arg4[%c0_16, %c3], %30 {strides = array<i32>} : memref<8x4xf32, #tpu.memory_space<vmem>>, vector<8x1xf32>,
    return
  }
  func.func @transform_0(%arg0: i32) -> (i32, i32) {
    %c0_i32 = arith.constant 0 : i32
    %c0_i32_0 = arith.constant 0 : i32
    return %arg0, %c0_i32 : i32, i32
  }
  func.func @transform_1(%arg0: i32) -> (i32, i32) {
    %c0_i32 = arith.constant 0 : i32
    %c0_i32_0 = arith.constant 0 : i32
    %c0_i32_1 = arith.constant 0 : i32
    return %c0_i32, %c0_i32_0 : i32, i32
  }
  func.func @transform_2(%arg0: i32) -> (i32, i32) {
    %c0_i32 = arith.constant 0 : i32
    %c0_i32_0 = arith.constant 0 : i32
    %c0_i32_1 = arith.constant 0 : i32
    return %c0_i32, %c0_i32_0 : i32, i32
  }
  func.func @transform_3(%arg0: i32) -> (i32, i32) {
    %c0_i32 = arith.constant 0 : i32
    %c0_i32_0 = arith.constant 0 : i32
    return %arg0, %c0_i32 : i32, i32
  }
}

</mosaic_0001>

<bundles_post_ra>
// kernel: tpu_custom_call.1
= control target key start
LH: loop header
LB: loop body
LE: loop exit
PB: predicated region body
PF: predicated region fallthrough
CT: control target
= control target key end

     0   :  { %vm45_vm0 = vcmask 130048   ;;  %vm89_vm1 = vcmask 523264   ;;  %vm149_vm2 = vcmask 23552   ;;  %vm170_vm6 = vcmask 31768   ;;  %s297_s1 = inlined_call_operand.vmem [shape: bf16[144,64], index: 1, kind: input, shape index: {}]   ;;  %s298_s0 = inlined_call_operand.vmem [shape: f32[8,16], index: 0, kind: input, shape index: {}]   ;;  %s299_s2 = inlined_call_operand.vmem [shape: f32[3,64], index: 2, kind: input, shape index: {}]   ;;  %s300_s3 = inlined_call_operand.vmem [shape: f32[8,4], index: 3, kind: output, shape index: {}]  }
   0x1   :  { %v216_v0 = vld [vmem:[%s297_s1] sm:$0xff]  ;;  %v219_v4 = vld [vmem:[%s297_s1 + $0x18] sm:$0xff]  ;;  %v218_v5 = vld [vmem:[%s297_s1 + $0x10] sm:$0xff] }
   0x2   :  { %v36_v1 = vld [vmem:[%s298_s0] sm:$0xff]  ;;  %56 = vmatpush.bf16.msra.mxu0 %v216_v0  ;;  %v217_v6 = vld [vmem:[%s297_s1 + $0x8] sm:$0xff]  ;;  %v223_v8 = vld [vmem:[%s297_s1 + $0x38] sm:$0xff] }
   0x3   :  { %v220_v2 = vld [vmem:[%s297_s1 + $0x20] sm:$0xff]  ;;  %v37_v3 = vpack.c.bf16 %v36_v1, %v36_v1  ;;  %v222_v15 = vld [vmem:[%s297_s1 + $0x30] sm:$0xff]  ;;  %v221_v16 = vld [vmem:[%s297_s1 + $0x28] sm:$0xff] }
   0x4   :  { %97 = vmatpush.bf16.msra.mxu1 %v220_v2  ;;  %v224_v7 = vld [vmem:[%s297_s1 + $0x40] sm:$0xff] }
   0x5   :  { %180 = vmatmul.msk.bf16.vlgmr.msra.gmra.mxu0 %vm45_vm0, %v37_v3  ;;  %140 = vmatpush.bf16.msra.mxu2 %v224_v7  ;;  %v225_v9 = vld [vmem:[%s299_s2] ss:$0 sm:$0xff]  ;;  %v226_v17 = vld [vmem:[%s299_s2 + $0x1] ss:$0 sm:$0xff]  ;;  %v227_v23 = vld [vmem:[%s299_s2 + $0x2] ss:$0 sm:$0xff] }
   0x8   :  { %98 = vmatpush.bf16.msra.mxu1 %v219_v4 }
   0x9   :  { %141 = vmatpush.bf16.msra.mxu2 %v223_v8 }
   0xc   :  { %99 = vmatpush.bf16.msra.mxu1 %v218_v5 }
   0xd   :  { %142 = vmatpush.bf16.msra.mxu2 %v222_v15 }
  0x10   :  { %100 = vmatpush.bf16.msra.mxu1 %v217_v6 }
  0x11   :  { %143 = vmatpush.bf16.msra.mxu2 %v221_v16 }
  0x82   :  { %v58_v10 = vpop.f32.mrf.mxu0 }
  0x83   :  { %v59_v11 = vadd.f32 %v225_v9, %v58_v10 }
  0x85   :  { %v62_v12 = vmax.f32 %v59_v11, 0.0 }
  0x87   :  { %v63_v13 = vpack.c.bf16 %v62_v12, %v62_v12 }
  0x89   :  { %197 = vmatmul.msk.bf16.vlgmr.msra.gmra.mxu1 %vm89_vm1, %v63_v13 }
  0x8a   :  { %v60_v14 = vpop.f32.mrf.mxu0 }
 0x106   :  { %v102_v18 = vpop.f32.mrf.mxu1 }
 0x107   :  { %v103_v19 = vadd.f32 %v226_v17, %v102_v18 }
 0x109   :  { %v106_v20 = vmax.f32 %v103_v19, 0.0 }
 0x10b   :  { %v107_v21 = vpack.c.bf16 %v106_v20, %v106_v20 }
 0x10d   :  { %214 = vmatmul.msk.bf16.vlgmr.msra.gmra.mxu2 %vm89_vm1, %v107_v21 }
 0x10e   :  { %v104_v22 = vpop.f32.mrf.mxu1 }
 0x190   :  { %v145_v24 = vpop.f32.mrf.mxu2 }
 0x191   :  { %v146_v25 = vadd.f32 %v227_v23, %v145_v24 }
 0x193   :  { %150 = vst.msk [vmem:[%s300_s3] sm:$0xff] %vm149_vm2, %v146_v25  ;;  %v215_v26 = vmul.f32 -1.442695, %v146_v25 }
 0x195   :  { %228 = vpow2.f32 %v215_v26 }
 0x198   :  { %v147_v27 = vpop.f32.mrf.mxu2 }
 0x19b   :  { %v229_v28 = vpop.eup %228 }
 0x19c   :  { %v154_v29 = vadd.f32 1.0, %v229_v28 }
 0x19e   :  { %230 = vrcp.f32 %v154_v29  ;;  %v166_v33 = vand.u32 2147483648, %v154_v29  ;;  %v164_v35 = vand.u32 2147483647, %v154_v29  ;;  %vm160_vm4 = vweird.f32 %v154_v29 }
 0x1a0   :  { %v167_v37 = vor.u32 1.1754944e-38, %v166_v33  ;;  %vm165_vm7 = vcmp.eq.f32.partialorder %v164_v35, 8.507059e+37 }
 0x1a4   :  { %v231_v30 = vpop.eup %230 }
 0x1a5   :  { %v156_v31 = vmul.f32 %v231_v30, %v154_v29  ;;  %vm161_vm3 = vweird.f32 %v231_v30 }
 0x1a6   :  { %vm162_vm5 = vmor %vm160_vm4, %vm161_vm3 }
 0x1a7   :  { %v157_v32 = vsub.f32 1.0, %v156_v31 }
 0x1a9   :  { %v158_v34 = vmul.f32 %v231_v30, %v157_v32 }
 0x1ab   :  { %v159_v36 = vadd.f32 %v231_v30, %v158_v34 }
 0x1ad   :  { %v163_v38 = vsel %vm162_vm5, %v231_v30, %v159_v36 }
 0x1ae   :  { %v168_v39 = vsel %vm165_vm7, %v167_v37, %v163_v38 }
 0x1af   :  { %171 = vst.msk [vmem:[%s300_s3] sm:$0xff] %vm170_vm6, %v168_v39 }

</bundles_post_ra>
